<compile_context>
chip_gen: v6e
topology: v6e:2x2x1
jax: 0.10.0
libtpu: 0.0.40
codegen_flags: <defaults>
</compile_context>

<pallas_src>
import math

import jax
import jax.numpy as jnp
from jax.experimental import pallas as pl
from jax.experimental.pallas import tpu as pltpu


def _round_up(x, m):
    return (x + m - 1) // m * m


# ----------------------------------------------------------------------------
# Kernel: one batch tile of the full 3-layer MLP.
#   x_ref   [TB, S+A]  f32 (concat of state||action)
#   w1_ref  [S+A, H]   bf16      b1_ref [1, H] f32
#   w2_ref  [H, H]     bf16      b2_ref [1, H] f32
#   w3_ref  [1, H]     f32       b3_ref [1, 1] f32 (SMEM scalar)
#   out_ref [TB, 1]    f32
# ----------------------------------------------------------------------------
def _critic_kernel(x_ref, w1_ref, b1_ref, w2_ref, b2_ref, w3_ref, b3_ref,
                   out_ref):
    # ---- layer 1: single fused matmul over the concatenated input ----------
    x = x_ref[...].astype(jnp.bfloat16)                          # [TB, S+A]
    h1 = jnp.dot(x, w1_ref[...], preferred_element_type=jnp.float32)
    h1 = jnp.maximum(h1 + b1_ref[...], 0.0)                      # [TB, H] f32

    # ---- layer 2 ------------------------------------------------------------
    h2 = jnp.dot(h1.astype(jnp.bfloat16), w2_ref[...],
                 preferred_element_type=jnp.float32)
    h2 = jnp.maximum(h2 + b2_ref[...], 0.0)                      # [TB, H] f32

    # ---- layer 3: output width 1 -> VPU multiply + folded lane reduction ----
    p = h2 * w3_ref[...]                                         # [TB, H] f32
    hidden = p.shape[-1]
    if hidden > 128 and hidden % 128 == 0:
        # Fold 128-lane chunks with cheap VALU adds (vreg-aligned static
        # slices), leaving a single 128-lane XLU reduce.
        acc = p[:, 0:128]
        for c in range(1, hidden // 128):
            acc = acc + p[:, c * 128:(c + 1) * 128]
    else:
        acc = p
    out_ref[...] = jnp.sum(acc, axis=-1, keepdims=True) + b3_ref[0, 0]


# ----------------------------------------------------------------------------
# Wrapper: tiles the batch axis, keeps weights VMEM-resident across grid
# steps, and lets Pallas handle the ragged last block (no pad / slice ops).
# ----------------------------------------------------------------------------
def _choose_batch_tile(batch, tb_max):
    """Batch tile: multiple of 8; >=2 grid steps for batch>=512 (v7x 2 TCs)."""
    if batch >= 512:
        tb = _round_up(-(-batch // 2), 256)      # ceil(B/2) rounded to 256
    else:
        tb = _round_up(batch, 8)
    return max(8, min(tb, tb_max))


def critic_forward(state, action, params, *, tb=2048):
    """state: [B, state_dim], action: [B, action_dim] -> q-values [B, 1].

    params = (w1, b1, w2, b2, w3, b3) with w1 [S+A, H] bf16, w2 [H, H] bf16,
    b1/b2 [1, H] f32, w3 [1, H] f32, b3 [1, 1] f32 (see init_critic_params).
    Training code should keep f32 masters and refresh the bf16 copies once
    per optimizer step rather than casting per forward call.
    """
    w1, b1, w2, b2, w3, b3 = params
    batch = state.shape[0]
    in_dim, hidden = w1.shape

    # One wrapper-side concat (== torch.cat([state, action], 1)); this lets
    # the kernel run a single padded-K MXU pass for layer 1.
    x = jnp.concatenate([state, action], axis=1)                 # [B, S+A] f32

    tb = _choose_batch_tile(batch, tb)
    n_tiles = pl.cdiv(batch, tb)     # ragged last block: read-padded inputs,
                                     # out-of-range output rows write-masked

    flops = 2 * batch * (in_dim * hidden + hidden * hidden + hidden)
    bytes_accessed = ((w1.size + w2.size) * 2                    # bf16 weights
                      + (b1.size + b2.size + w3.size + b3.size) * 4
                      + (x.size + batch) * 4)                    # activations

    return pl.pallas_call(
        _critic_kernel,
        out_shape=jax.ShapeDtypeStruct((batch, 1), jnp.float32),
        grid_spec=pltpu.PrefetchScalarGridSpec(
            num_scalar_prefetch=0,
            grid=(n_tiles,),
            in_specs=[
                pl.BlockSpec((tb, in_dim), lambda i: (i, 0)),
                # weights/biases: constant block index -> DMA'd once, resident
                pl.BlockSpec((in_dim, hidden), lambda i: (0, 0)),
                pl.BlockSpec((1, hidden), lambda i: (0, 0)),
                pl.BlockSpec((hidden, hidden), lambda i: (0, 0)),
                pl.BlockSpec((1, hidden), lambda i: (0, 0)),
                pl.BlockSpec((1, hidden), lambda i: (0, 0)),
                pl.BlockSpec((1, 1), lambda i: (0, 0),
                             memory_space=pltpu.SMEM),            # scalar b3
            ],
            out_specs=pl.BlockSpec((tb, 1), lambda i: (i, 0)),
        ),
        compiler_params=pltpu.CompilerParams(
            dimension_semantics=("parallel",),
            vmem_limit_bytes=32 * 1024 * 1024),
        cost_estimate=pl.CostEstimate(flops=flops, transcendentals=0,
                                      bytes_accessed=bytes_accessed),
    )(x, w1, b1, w2, b2, w3, b3)


# ----------------------------------------------------------------------------
# Deterministic parameter init mirroring the PyTorch __init__:
#   nn.init.xavier_uniform_ on weights (fans computed on the combined first
#   layer, like torch), bias filled with 0.01.  Weights are stored [in, out]
#   (transpose of torch's [out, in]); the MXU matmul weights are kept as
#   persistent bf16 copies.
# ----------------------------------------------------------------------------
def init_critic_params(key, state_dim, action_dim, hidden=512):
    def xavier(k, fan_in, fan_out):
        bound = math.sqrt(6.0 / (fan_in + fan_out))
        return jax.random.uniform(k, (fan_in, fan_out), jnp.float32,
                                  minval=-bound, maxval=bound)

    k1, k2, k3 = jax.random.split(key, 3)
    in_dim = state_dim + action_dim
    w1 = xavier(k1, in_dim, hidden).astype(jnp.bfloat16)   # [S+A, H] bf16
    b1 = jnp.full((1, hidden), 0.01, jnp.float32)
    w2 = xavier(k2, hidden, hidden).astype(jnp.bfloat16)   # [H, H]   bf16
    b2 = jnp.full((1, hidden), 0.01, jnp.float32)
    w3 = xavier(k3, hidden, 1).reshape(1, hidden)          # [1, H]   f32 row
    b3 = jnp.full((1, 1), 0.01, jnp.float32)
    return (w1, b1, w2, b2, w3, b3)


if __name__ == "__main__":
    state_dim, action_dim, batch = 14, 2, 8

    key = jax.random.PRNGKey(0)
    k_params, k_state, k_action = jax.random.split(key, 3)

    params = init_critic_params(k_params, state_dim, action_dim)
    state = jax.random.normal(k_state, (batch, state_dim), jnp.float32)
    action = jax.random.normal(k_action, (batch, action_dim), jnp.float32)

    q = critic_forward(state, action, params)
    jax.block_until_ready(q)

    # Reference with the same bf16-matmul / f32-accumulate numerics as the
    # kernel (bf16 is a deliberate MXU fast-path choice; loosen tolerances
    # if comparing against a pure-f32 torch forward).
    w1, b1, w2, b2, w3, b3 = params
    x = jnp.concatenate([state, action], axis=1).astype(jnp.bfloat16)
    h1 = jnp.maximum(
        jnp.dot(x, w1, preferred_element_type=jnp.float32) + b1, 0.0)
    h2 = jnp.maximum(
        jnp.dot(h1.astype(jnp.bfloat16), w2,
                preferred_element_type=jnp.float32) + b2, 0.0)
    ref = jnp.sum(h2 * w3, axis=-1, keepdims=True) + b3

    assert q.shape == (batch, 1)
    assert jnp.allclose(q, ref, atol=1e-3, rtol=1e-3), (
        float(jnp.max(jnp.abs(q - ref))))

    print("KERNEL_OK")
</pallas_src>

<mosaic_0001>
module attributes {stable_mosaic.version = 11 : i64} {
  func.func @_critic_kernel(%arg0: i32, %arg1: memref<8x16xf32, #tpu.memory_space<vmem>>, %arg2: memref<16x512xbf16, #tpu.memory_space<vmem>>, %arg3: memref<1x512xf32, #tpu.memory_space<vmem>>, %arg4: memref<512x512xbf16, #tpu.memory_space<vmem>>, %arg5: memref<1x512xf32, #tpu.memory_space<vmem>>, %arg6: memref<1x512xf32, #tpu.memory_space<vmem>>, %arg7: memref<1x1xf32, #tpu.memory_space<smem>>, %arg8: memref<8x1xf32, #tpu.memory_space<vmem>>) attributes {dimension_semantics = [#tpu.dimension_semantics<parallel>], iteration_bounds = array<i64: 1>, scalar_prefetch = 0 : i64, scratch_operands = 0 : i64, tpu.core_type = #tpu.core_type<tc>, window_params = [{transform_indices = @transform_0, window_bounds = array<i64: 8, 16>}, {pipeline_mode = #tpu.pipeline_mode<synchronous>, transform_indices = @transform_1, window_bounds = array<i64: 16, 512>}, {pipeline_mode = #tpu.pipeline_mode<synchronous>, transform_indices = @transform_2, window_bounds = array<i64: 1, 512>}, {pipeline_mode = #tpu.pipeline_mode<synchronous>, transform_indices = @transform_3, window_bounds = array<i64: 512, 512>}, {pipeline_mode = #tpu.pipeline_mode<synchronous>, transform_indices = @transform_4, window_bounds = array<i64: 1, 512>}, {pipeline_mode = #tpu.pipeline_mode<synchronous>, transform_indices = @transform_5, window_bounds = array<i64: 1, 512>}, {transform_indices = @transform_6, window_bounds = array<i64: 1, 1>}, {transform_indices = @transform_7, window_bounds = array<i64: 8, 1>}]} {
    %c0 = arith.constant 0 : index
    %c0_0 = arith.constant 0 : index
    %0 = vector.load %arg1[%c0, %c0_0] : memref<8x16xf32, #tpu.memory_space<vmem>>, vector<8x16xf32>
    %1 = arith.truncf %0 : vector<8x16xf32> to vector<8x16xbf16>
    %c0_1 = arith.constant 0 : index
    %c0_2 = arith.constant 0 : index
    %2 = vector.load %arg2[%c0_1, %c0_2] : memref<16x512xbf16, #tpu.memory_space<vmem>>, vector<16x512xbf16>
    %cst = arith.constant dense<0.000000e+00> : vector<8x512xf32>
    %3 = tpu.matmul %1, %2, %cst {dimension_numbers = #tpu.dot_dimension_numbers<[1], [0], [0], [1], [0, 0, 1, 1], [], []>} : vector<8x16xbf16>, vector<16x512xbf16>, vector<8x512xf32> -> vector<8x512xf32>
    %c0_3 = arith.constant 0 : index
    %c0_4 = arith.constant 0 : index
    %4 = vector.load %arg3[%c0_3, %c0_4] : memref<1x512xf32, #tpu.memory_space<vmem>>, vector<1x512xf32>
    %5 = vector.broadcast %4 : vector<1x512xf32> to vector<8x512xf32>
    %6 = arith.addf %3, %5 : vector<8x512xf32>
    %cst_5 = arith.constant 0.000000e+00 : f32
    %7 = vector.broadcast %cst_5 : f32 to vector<8x512xf32>
    %8 = arith.maximumf %6, %7 : vector<8x512xf32>
    %9 = arith.truncf %8 : vector<8x512xf32> to vector<8x512xbf16>
    %c0_6 = arith.constant 0 : index
    %c0_7 = arith.constant 0 : index
    %10 = vector.load %arg4[%c0_6, %c0_7] : memref<512x512xbf16, #tpu.memory_space<vmem>>, vector<512x512xbf16>
    %cst_8 = arith.constant dense<0.000000e+00> : vector<8x512xf32>
    %11 = tpu.matmul %9, %10, %cst_8 {dimension_numbers = #tpu.dot_dimension_numbers<[1], [0], [0], [1], [0, 0, 1, 1], [], []>} : vector<8x512xbf16>, vector<512x512xbf16>, vector<8x512xf32> -> vector<8x512xf32>
    %c0_9 = arith.constant 0 : index
    %c0_10 = arith.constant 0 : index
    %12 = vector.load %arg5[%c0_9, %c0_10] : memref<1x512xf32, #tpu.memory_space<vmem>>, vector<1x512xf32>
    %13 = vector.broadcast %12 : vector<1x512xf32> to vector<8x512xf32>
    %14 = arith.addf %11, %13 : vector<8x512xf32>
    %cst_11 = arith.constant 0.000000e+00 : f32
    %15 = vector.broadcast %cst_11 : f32 to vector<8x512xf32>
    %16 = arith.maximumf %14, %15 : vector<8x512xf32>
    %c0_12 = arith.constant 0 : index
    %c0_13 = arith.constant 0 : index
    %17 = vector.load %arg6[%c0_12, %c0_13] : memref<1x512xf32, #tpu.memory_space<vmem>>, vector<1x512xf32>
    %18 = vector.broadcast %17 : vector<1x512xf32> to vector<8x512xf32>
    %19 = arith.mulf %16, %18 : vector<8x512xf32>
    %20 = vector.extract_strided_slice %19 {offsets = [0, 0], sizes = [8, 128], strides = [1, 1]} : vector<8x512xf32> to vector<8x128xf32>
    %21 = vector.extract_strided_slice %19 {offsets = [0, 128], sizes = [8, 128], strides = [1, 1]} : vector<8x512xf32> to vector<8x128xf32>
    %22 = arith.addf %20, %21 : vector<8x128xf32>
    %23 = vector.extract_strided_slice %19 {offsets = [0, 256], sizes = [8, 128], strides = [1, 1]} : vector<8x512xf32> to vector<8x128xf32>
    %24 = arith.addf %22, %23 : vector<8x128xf32>
    %25 = vector.extract_strided_slice %19 {offsets = [0, 384], sizes = [8, 128], strides = [1, 1]} : vector<8x512xf32> to vector<8x128xf32>
    %26 = arith.addf %24, %25 : vector<8x128xf32>
    %cst_14 = arith.constant dense<0.000000e+00> : vector<8xf32>
    %27 = vector.multi_reduction <add>, %26, %cst_14 [1] : vector<8x128xf32> to vector<8xf32>
    %28 = vector.shape_cast %27 : vector<8xf32> to vector<8x1xf32>
    %c0_15 = arith.constant 0 : index
    %c0_16 = arith.constant 0 : index
    %29 = memref.load %arg7[%c0_15, %c0_16] : memref<1x1xf32, #tpu.memory_space<smem>>
    %30 = vector.broadcast %29 : f32 to vector<8x1xf32>
    %31 = arith.addf %28, %30 : vector<8x1xf32>
    %c0_17 = arith.constant 0 : index
    %c0_18 = arith.constant 0 : index
    %32 = vector.load %arg8[%c0_17, %c0_18] : memref<8x1xf32, #tpu.memory_space<vmem>>, vector<8x1xf32>
    tpu.vector_store %arg8[%c0_17, %c0_18], %31 {strides = array<i32>} : memref<8x1xf32, #tpu.memory_space<vmem>>, vector<8x1xf32>,
    return
  }
  func.func @transform_0(%arg0: i32) -> (i32, i32) {
    %c0_i32 = arith.constant 0 : i32
    %c0_i32_0 = arith.constant 0 : i32
    return %arg0, %c0_i32 : i32, i32
  }
  func.func @transform_1(%arg0: i32) -> (i32, i32) {
    %c0_i32 = arith.constant 0 : i32
    %c0_i32_0 = arith.constant 0 : i32
    %c0_i32_1 = arith.constant 0 : i32
    return %c0_i32, %c0_i32_0 : i32, i32
  }
  func.func @transform_2(%arg0: i32) -> (i32, i32) {
    %c0_i32 = arith.constant 0 : i32
    %c0_i32_0 = arith.constant 0 : i32
    %c0_i32_1 = arith.constant 0 : i32
    return %c0_i32, %c0_i32_0 : i32, i32
  }
  func.func @transform_3(%arg0: i32) -> (i32, i32) {
    %c0_i32 = arith.constant 0 : i32
    %c0_i32_0 = arith.constant 0 : i32
    %c0_i32_1 = arith.constant 0 : i32
    return %c0_i32, %c0_i32_0 : i32, i32
  }
  func.func @transform_4(%arg0: i32) -> (i32, i32) {
    %c0_i32 = arith.constant 0 : i32
    %c0_i32_0 = arith.constant 0 : i32
    %c0_i32_1 = arith.constant 0 : i32
    return %c0_i32, %c0_i32_0 : i32, i32
  }
  func.func @transform_5(%arg0: i32) -> (i32, i32) {
    %c0_i32 = arith.constant 0 : i32
    %c0_i32_0 = arith.constant 0 : i32
    %c0_i32_1 = arith.constant 0 : i32
    return %c0_i32, %c0_i32_0 : i32, i32
  }
  func.func @transform_6(%arg0: i32) -> (i32, i32) {
    %c0_i32 = arith.constant 0 : i32
    %c0_i32_0 = arith.constant 0 : i32
    %c0_i32_1 = arith.constant 0 : i32
    return %c0_i32, %c0_i32_0 : i32, i32
  }
  func.func @transform_7(%arg0: i32) -> (i32, i32) {
    %c0_i32 = arith.constant 0 : i32
    %c0_i32_0 = arith.constant 0 : i32
    return %arg0, %c0_i32 : i32, i32
  }
}

</mosaic_0001>

<bundles_post_ra>
// kernel: tpu_custom_call.1
= control target key start
LH: loop header
LB: loop body
LE: loop exit
PB: predicated region body
PF: predicated region fallthrough
CT: control target
= control target key end

     0   :  { %13 = vsyncpa [#allocation4], 0  ;;  %s1746_s0 = inlined_call_operand.hbm [shape: f32[8,16], index: 0, kind: input, shape index: {}]   ;;  %s1747_s1 = inlined_call_operand.hbm [shape: bf16[16,512], index: 1, kind: input, shape index: {}]   ;;  %s1748_s2 = inlined_call_operand.vmem [shape: f32[1,512], index: 2, kind: input, shape index: {}]   ;;  %s1749_s3 = inlined_call_operand.hbm [shape: bf16[512,512], index: 3, kind: input, shape index: {}]   ;;  %s1750_s4 = inlined_call_operand.vmem [shape: f32[1,512], index: 4, kind: input, shape index: {}]   ;;  %s1751_s5 = inlined_call_operand.hbm [shape: f32[1,512], index: 5, kind: input, shape index: {}]   ;;  %s1752_s6 = inlined_call_operand.<no memory space> [shape: f32[1,1], index: 6, kind: input, shape index: {}]   ;;  %s1753_s7 = inlined_call_operand.vmem [shape: f32[8,1], index: 7, kind: output, shape index: {}]  }
   0x1   :  { %14 = vsyncpa [#allocation6], 0 }
   0x2   :  { %15 = vsyncpa [#allocation9], 0  ;;  %s1647_s24 = smov [#allocation5]  }
   0x3   :  { %s31_s25 = sshll.u32 %s1647_s24, 4  ;;  %s32_s25 = int_to_ptr.vmem [resolvable:$true] %s31_s25 }
   0x4   :  { %s1569_s26 = scalar_lea.vmem %s32_s25, 512  ;;  %p1574_p1 = scmp.lt.s32.totalorder %s32_s25, %s32_s25 }
   0x5   :  { %p1570_p0 = scmp.ne.s32.totalorder %s32_s25, %s1569_s26  ;;  %p1575_p2 = scmp.lt.s32.totalorder %s1569_s26, %s1569_s26 }
   0x7   :  { %p1576_p3 = por %p1575_p2, %p1574_p1 }
   0x9   :  { %p1577_p4 = pnand %p1576_p3, %p1570_p0 }
   0xb   :  { %1580 = shalt.err (!%p1577_p4)
}
   0xc   :  { %s1648_s27 = smov 256   ;;  %s1649_s28 = smov 16  }
   0xd   :  { %37 = dma.hbm_to_vmem [thread:$0]  %s1747_s1, 512, %s32_s25, [#allocation6], %s1648_s27, %s1648_s27, %s1649_s28  }
   0xe   :  { %s1650_s8 = smov [#allocation3]   ;;  %s1651_s10 = smov [#allocation7]  }
   0xf   :  { %s22_s9 = sshll.u32 %s1650_s8, 4  ;;  %s45_s11 = sshll.u32 %s1651_s10, 4  ;;  %s23_s9 = int_to_ptr.vmem [resolvable:$true] %s22_s9  ;;  %s46_s11 = int_to_ptr.vmem [resolvable:$true] %s45_s11 }
  0x10   :  { %s1589_s12 = scalar_lea.vmem %s23_s9, 128  ;;  %p1594_p6 = scmp.lt.s32.totalorder %s23_s9, %s23_s9 }
  0x11   :  { %p1590_p5 = scmp.ne.s32.totalorder %s23_s9, %s1589_s12  ;;  %p1595_p7 = scmp.lt.s32.totalorder %s1589_s12, %s1589_s12 }
  0x13   :  { %p1596_p8 = por %p1595_p7, %p1594_p6 }
  0x15   :  { %p1597_p9 = pnand %p1596_p8, %p1590_p5 }
  0x17   :  { %1600 = shalt.err (!%p1597_p9)
}
  0x18   :  { %25 = dma.hbm_to_vmem [thread:$0]  %s1746_s0, 128, %s23_s9, [#allocation4]  }
  0x19   :  { %s1609_s15 = scalar_lea.vmem %s46_s11, 16384  ;;  %p1614_p11 = scmp.lt.s32.totalorder %s46_s11, %s46_s11 }
  0x1a   :  { %p1610_p10 = scmp.ne.s32.totalorder %s46_s11, %s1609_s15  ;;  %p1615_p12 = scmp.lt.s32.totalorder %s1609_s15, %s1609_s15 }
  0x1c   :  { %p1616_p13 = por %p1615_p12, %p1614_p11 }
  0x1e   :  { %p1617_p0 = pnand %p1616_p13, %p1610_p10 }
  0x20   :  { %1620 = shalt.err (!%p1617_p0)
}
  0x21   :  { %51 = dma.hbm_to_vmem [thread:$0]  %s1749_s3, 16384, %s46_s11, [#allocation6], %s1648_s27, %s1648_s27, %s1649_s28  }
  0x22   :  { %s1652_s17 = smov [#allocation8]  }
  0x23   :  { %s60_s18 = sshll.u32 %s1652_s17, 4  ;;  %s61_s18 = int_to_ptr.vmem [resolvable:$true] %s60_s18 }
  0x24   :  { %s1629_s19 = scalar_lea.vmem %s61_s18, 64  ;;  %p1634_p2 = scmp.lt.s32.totalorder %s61_s18, %s61_s18 }
  0x25   :  { %p1630_p1 = scmp.ne.s32.totalorder %s61_s18, %s1629_s19  ;;  %p1635_p3 = scmp.lt.s32.totalorder %s1629_s19, %s1629_s19 }
  0x27   :  { %p1636_p4 = por %p1635_p3, %p1634_p2 }
  0x29   :  { %p1637_p5 = pnand %p1636_p4, %p1630_p1 }
  0x2b   :  { %1640 = shalt.err (!%p1637_p5)
}
  0x2c   :  { %63 = dma.hbm_to_vmem [thread:$0]  %s1751_s5, 64, %s61_s18, [#allocation9]  }
  0x2d   :  { %1641 = dma.done.wait [#allocation4], 128  }
  0x2e   :  { %1642 = vsyncadd [#allocation4], 4294967168 }
  0x2f   :  { %1643 = dma.done.wait [#allocation6], 16896  }
  0x30   :  { %1644 = vsyncadd [#allocation6], 4294950400 }
  0x31   :  { %1645 = dma.done.wait [#allocation9], 64  }
  0x32   :  { %1646 = vsyncadd [#allocation9], 4294967232  ;;  %v1653_v0 = vmov 0   ;;  %v1363_v1 = vld [vmem:[#allocation5 + $0x4] ss:$16 sps:$4 sm:$0xff]   ;;  %v79_v5 = vld [vmem:[#allocation3] sm:$0xff] }
  0x33   :  { %163 = vmatprep.mubr.bf16.mxu0 %v1653_v0  ;;  %204 = vmatprep.mubr.bf16.mxu1 %v1653_v0  ;;  %v1365_v2 = vld [vmem:[#allocation5 + $0xc] ss:$16 sps:$4 sm:$0xff]   ;;  %v1367_v3 = vld [vmem:[#allocation5] ss:$16 sps:$4 sm:$0xff]   ;;  %v1368_v4 = vld [vmem:[#allocation5 + $0x8] ss:$16 sps:$4 sm:$0xff]   ;;  %v80_v6 = vpack.c.bf16 %v79_v5, %v79_v5 }
  0x34   :  { %145 = vmatprep.subr.bf16.mxu0 %v1363_v1  ;;  %186 = vmatprep.subr.bf16.mxu1 %v1365_v2  ;;  %v1369_v7 = vld [vmem:[#allocation7 + $0xe0] ss:$16 sps:$4 sm:$0xff]   ;;  %vm127_vm0 = vcmask 130048   ;;  %v1371_v8 = vld [vmem:[#allocation7 + $0xe4] ss:$16 sps:$4 sm:$0xff]   ;;  %vm1213_vm1 = vcmask 7168  }
  0x35   :  { %146 = vmatpush1.bf16.msra.mxu0 %v1367_v3  ;;  %187 = vmatpush1.bf16.msra.mxu1 %v1368_v4  ;;  %v1372_v9 = vld [vmem:[#allocation7 + $0x2e0] ss:$16 sps:$4 sm:$0xff]   ;;  %v1374_v10 = vld [vmem:[#allocation7 + $0x2e4] ss:$16 sps:$4 sm:$0xff]  }
  0x36   :  { %1011 = vmatprep.subr.bf16.mxu0 %v1371_v8  ;;  %v1377_v11 = vld [vmem:[#allocation7 + $0xc4] ss:$16 sps:$4 sm:$0xff]   ;;  %v1375_v12 = vld [vmem:[#allocation7 + $0xc0] ss:$16 sps:$4 sm:$0xff]   ;;  %1052 = vmatprep.subr.bf16.mxu1 %v1374_v10  ;;  %v1470_v8 = vld [vmem:[#allocation7 + $0x2ec] ss:$16 sps:$4 sm:$0xff]  }
  0x37   :  { %v1380_v13 = vld [vmem:[#allocation7 + $0x2c4] ss:$16 sps:$4 sm:$0xff]   ;;  %v1378_v14 = vld [vmem:[#allocation7 + $0x2c0] ss:$16 sps:$4 sm:$0xff]  }
  0x38   :  { %1226 = vmatmul.mubr.msk.bf16.vlgmr.msra.gmra.mxu0 %vm127_vm0, %v80_v6  ;;  %1227 = vmatmul.mubr.msk.bf16.vlgmr.msra.gmra.mxu1 %vm127_vm0, %v80_v6  ;;  %v1383_v15 = vld [vmem:[#allocation7 + $0xa4] ss:$16 sps:$4 sm:$0xff]   ;;  %v1381_v17 = vld [vmem:[#allocation7 + $0xa0] ss:$16 sps:$4 sm:$0xff]  }
  0x39   :  { %1012 = vmatpush1.bf16.msra.mxu0 %v1369_v7  ;;  %1053 = vmatpush1.bf16.msra.mxu1 %v1372_v9  ;;  %v1386_v16 = vld [vmem:[#allocation7 + $0x2a4] ss:$16 sps:$4 sm:$0xff]   ;;  %v1384_v18 = vld [vmem:[#allocation7 + $0x2a0] ss:$16 sps:$4 sm:$0xff]   ;;  %v1467_v7 = vld [vmem:[#allocation7 + $0xec] ss:$16 sps:$4 sm:$0xff]   ;;  %v87_v9 = vlaneseq }
  0x3a   :  { %1013 = vmatprep.subr.bf16.mxu0 %v1377_v11  ;;  %1054 = vmatprep.subr.bf16.mxu1 %v1380_v13  ;;  %v1389_v19 = vld [vmem:[#allocation7 + $0x84] ss:$16 sps:$4 sm:$0xff]   ;;  %v1387_v21 = vld [vmem:[#allocation7 + $0x80] ss:$16 sps:$4 sm:$0xff]   ;;  %v85_v13 = vld [vmem:[%s1748_s2] sm:$0xf] }
  0x3b   :  { %v1392_v20 = vld [vmem:[#allocation7 + $0x284] ss:$16 sps:$4 sm:$0xff]   ;;  %v1390_v22 = vld [vmem:[#allocation7 + $0x280] ss:$16 sps:$4 sm:$0xff]   ;;  %v88_v10 = vshrl.u32 %v87_v9, 7 }
  0x3c   :  { %v1395_v23 = vld [vmem:[#allocation7 + $0x64] ss:$16 sps:$4 sm:$0xff]   ;;  %v1393_v25 = vld [vmem:[#allocation7 + $0x60] ss:$16 sps:$4 sm:$0xff]   ;;  %v1516_v9 = vld [vmem:[#allocation7 + $0x3e8] ss:$16 sps:$4 sm:$0xff]  }
  0x3d   :  { %1014 = vmatpush1.bf16.msra.mxu0 %v1375_v12  ;;  %1055 = vmatpush1.bf16.msra.mxu1 %v1378_v14  ;;  %v1398_v24 = vld [vmem:[#allocation7 + $0x264] ss:$16 sps:$4 sm:$0xff]   ;;  %v1396_v26 = vld [vmem:[#allocation7 + $0x260] ss:$16 sps:$4 sm:$0xff]   ;;  %v1706_v11 = vsub.s32 0, %v88_v10  ;;  %v1708_v12 = vsub.s32 2, %v88_v10 }
  0x3e   :  { %1015 = vmatprep.subr.bf16.mxu0 %v1383_v15  ;;  %1056 = vmatprep.subr.bf16.mxu1 %v1386_v16  ;;  %v1401_v27 = vld [vmem:[#allocation7 + $0x44] ss:$16 sps:$4 sm:$0xff]   ;;  %v1399_v29 = vld [vmem:[#allocation7 + $0x40] ss:$16 sps:$4 sm:$0xff]   ;;  %v1713_v14 = vsub.s32 1, %v88_v10  ;;  %v1715_v15 = vsub.s32 3, %v88_v10 }
  0x3f   :  { %v1404_v28 = vld [vmem:[#allocation7 + $0x244] ss:$16 sps:$4 sm:$0xff]   ;;  %v1402_v30 = vld [vmem:[#allocation7 + $0x240] ss:$16 sps:$4 sm:$0xff]   ;;  %v90_v16 = vrot.slane %v85_v13, %v1706_v11  ;;  %v1521_v10 = vld [vmem:[#allocation7 + $0x1cc] ss:$16 sps:$4 sm:$0xff]  }
  0x40   :  { %v1407_v31 = vld [vmem:[#allocation7 + $0x24] ss:$16 sps:$4 sm:$0xff]   ;;  %v1405_v33 = vld [vmem:[#allocation7 + $0x20] ss:$16 sps:$4 sm:$0xff]  }
  0x41   :  { %1016 = vmatpush1.bf16.msra.mxu0 %v1381_v17  ;;  %1057 = vmatpush1.bf16.msra.mxu1 %v1384_v18  ;;  %v1410_v32 = vld [vmem:[#allocation7 + $0x224] ss:$16 sps:$4 sm:$0xff]   ;;  %v1408_v34 = vld [vmem:[#allocation7 + $0x220] ss:$16 sps:$4 sm:$0xff]   ;;  %v98_v17 = vrot.slane %v85_v13, %v1708_v12  ;;  %v94_v18 = vrot.slane %v85_v13, %v1713_v14 }
  0x42   :  { %1017 = vmatprep.subr.bf16.mxu0 %v1389_v19  ;;  %1058 = vmatprep.subr.bf16.mxu1 %v1392_v20  ;;  %v1413_v35 = vld [vmem:[#allocation7 + $0x4] ss:$16 sps:$4 sm:$0xff]   ;;  %v1411_v37 = vld [vmem:[#allocation7] ss:$16 sps:$4 sm:$0xff]   ;;  %v102_v19 = vrot.slane %v85_v13, %v1715_v15  ;;  %v1524_v13 = vld [vmem:[#allocation7 + $0x3cc] ss:$16 sps:$4 sm:$0xff]  }
  0x43   :  { %v1416_v36 = vld [vmem:[#allocation7 + $0x204] ss:$16 sps:$4 sm:$0xff]   ;;  %v1414_v38 = vld [vmem:[#allocation7 + $0x200] ss:$16 sps:$4 sm:$0xff]  }
  0x44   :  { %v1419_v39 = vld [vmem:[#allocation7 + $0x1e4] ss:$16 sps:$4 sm:$0xff]   ;;  %v1417_v41 = vld [vmem:[#allocation7 + $0x1e0] ss:$16 sps:$4 sm:$0xff]  }
  0x45   :  { %1018 = vmatpush1.bf16.msra.mxu0 %v1387_v21  ;;  %1059 = vmatpush1.bf16.msra.mxu1 %v1390_v22  ;;  %v1422_v40 = vld [vmem:[#allocation7 + $0x3e4] ss:$16 sps:$4 sm:$0xff]   ;;  %v1420_v42 = vld [vmem:[#allocation7 + $0x3e0] ss:$16 sps:$4 sm:$0xff]  }
  0x46   :  { %1019 = vmatprep.subr.bf16.mxu0 %v1395_v23  ;;  %1060 = vmatprep.subr.bf16.mxu1 %v1398_v24  ;;  %v1425_v43 = vld [vmem:[#allocation7 + $0x1c4] ss:$16 sps:$4 sm:$0xff]   ;;  %v1423_v44 = vld [vmem:[#allocation7 + $0x1c0] ss:$16 sps:$4 sm:$0xff]  }
  0x47   :  { %v1428_v45 = vld [vmem:[#allocation7 + $0x3c4] ss:$16 sps:$4 sm:$0xff]   ;;  %v1426_v46 = vld [vmem:[#allocation7 + $0x3c0] ss:$16 sps:$4 sm:$0xff]  }
  0x48   :  { %v1431_v47 = vld [vmem:[#allocation7 + $0x1a4] ss:$16 sps:$4 sm:$0xff]   ;;  %v1429_v49 = vld [vmem:[#allocation7 + $0x1a0] ss:$16 sps:$4 sm:$0xff]  }
  0x49   :  { %1020 = vmatpush1.bf16.msra.mxu0 %v1393_v25  ;;  %1061 = vmatpush1.bf16.msra.mxu1 %v1396_v26  ;;  %v1434_v48 = vld [vmem:[#allocation7 + $0x3a4] ss:$16 sps:$4 sm:$0xff]   ;;  %v1432_v50 = vld [vmem:[#allocation7 + $0x3a0] ss:$16 sps:$4 sm:$0xff]  }
  0x4a   :  { %1021 = vmatprep.subr.bf16.mxu0 %v1401_v27  ;;  %1062 = vmatprep.subr.bf16.mxu1 %v1404_v28  ;;  %v1437_v51 = vld [vmem:[#allocation7 + $0x184] ss:$16 sps:$4 sm:$0xff]   ;;  %v1435_v53 = vld [vmem:[#allocation7 + $0x180] ss:$16 sps:$4 sm:$0xff]  }
  0x4b   :  { %v1440_v52 = vld [vmem:[#allocation7 + $0x384] ss:$16 sps:$4 sm:$0xff]   ;;  %v1438_v54 = vld [vmem:[#allocation7 + $0x380] ss:$16 sps:$4 sm:$0xff]  }
  0x4c   :  { %v1443_v55 = vld [vmem:[#allocation7 + $0x164] ss:$16 sps:$4 sm:$0xff]   ;;  %v1441_v57 = vld [vmem:[#allocation7 + $0x160] ss:$16 sps:$4 sm:$0xff]  }
  0x4d   :  { %1022 = vmatpush1.bf16.msra.mxu0 %v1399_v29  ;;  %1063 = vmatpush1.bf16.msra.mxu1 %v1402_v30  ;;  %v1446_v56 = vld [vmem:[#allocation7 + $0x364] ss:$16 sps:$4 sm:$0xff]   ;;  %v1444_v58 = vld [vmem:[#allocation7 + $0x360] ss:$16 sps:$4 sm:$0xff]  }
  0x4e   :  { %1023 = vmatprep.subr.bf16.mxu0 %v1407_v31  ;;  %1064 = vmatprep.subr.bf16.mxu1 %v1410_v32  ;;  %v1449_v59 = vld [vmem:[#allocation7 + $0x144] ss:$16 sps:$4 sm:$0xff]   ;;  %v1447_v61 = vld [vmem:[#allocation7 + $0x140] ss:$16 sps:$4 sm:$0xff]  }
  0x4f   :  { %v1452_v60 = vld [vmem:[#allocation7 + $0x344] ss:$16 sps:$4 sm:$0xff]   ;;  %v1450_v62 = vld [vmem:[#allocation7 + $0x340] ss:$16 sps:$4 sm:$0xff]  }
  0x50   :  { %v1455_v63 = vld [vmem:[#allocation7 + $0x124] ss:$16 sps:$4 sm:$0xff]   ;;  %v1453_v1 = vld [vmem:[#allocation7 + $0x120] ss:$16 sps:$4 sm:$0xff]  }
  0x51   :  { %1024 = vmatpush1.bf16.msra.mxu0 %v1405_v33  ;;  %1065 = vmatpush1.bf16.msra.mxu1 %v1408_v34  ;;  %v1458_v0 = vld [vmem:[#allocation7 + $0x324] ss:$16 sps:$4 sm:$0xff]   ;;  %v1456_v2 = vld [vmem:[#allocation7 + $0x320] ss:$16 sps:$4 sm:$0xff]  }
  0x52   :  { %1025 = vmatprep.subr.bf16.mxu0 %v1413_v35  ;;  %1066 = vmatprep.subr.bf16.mxu1 %v1416_v36  ;;  %v1461_v3 = vld [vmem:[#allocation7 + $0x104] ss:$16 sps:$4 sm:$0xff]   ;;  %v1459_v5 = vld [vmem:[#allocation7 + $0x100] ss:$16 sps:$4 sm:$0xff]  }
  0x53   :  { %v1464_v4 = vld [vmem:[#allocation7 + $0x304] ss:$16 sps:$4 sm:$0xff]   ;;  %v1462_v6 = vld [vmem:[#allocation7 + $0x300] ss:$16 sps:$4 sm:$0xff]  }
  0x55   :  { %1026 = vmatpush1.bf16.msra.mxu0 %v1411_v37  ;;  %1067 = vmatpush1.bf16.msra.mxu1 %v1414_v38 }
  0x56   :  { %1027 = vmatprep.subr.bf16.mxu0 %v1419_v39  ;;  %1068 = vmatprep.subr.bf16.mxu1 %v1422_v40  ;;  %v1465_v39 = vld [vmem:[#allocation7 + $0xe8] ss:$16 sps:$4 sm:$0xff]  }
  0x57   :  { %v1468_v40 = vld [vmem:[#allocation7 + $0x2e8] ss:$16 sps:$4 sm:$0xff]  }
  0x59   :  { %1028 = vmatpush2.bf16.msra.mxu0 %v1417_v41  ;;  %1069 = vmatpush2.bf16.msra.mxu1 %v1420_v42  ;;  %v1473_v42 = vld [vmem:[#allocation7 + $0xcc] ss:$16 sps:$4 sm:$0xff]  }
  0x5a   :  { %1029 = vmatprep.subr.bf16.mxu0 %v1425_v43  ;;  %1070 = vmatprep.subr.bf16.mxu1 %v1428_v45  ;;  %v1476_v43 = vld [vmem:[#allocation7 + $0x2cc] ss:$16 sps:$4 sm:$0xff]   ;;  %v1474_v45 = vld [vmem:[#allocation7 + $0x2c8] ss:$16 sps:$4 sm:$0xff]  }
  0x5d   :  { %1030 = vmatpush2.bf16.msra.mxu0 %v1423_v44  ;;  %1071 = vmatpush2.bf16.msra.mxu1 %v1426_v46  ;;  %v1471_v44 = vld [vmem:[#allocation7 + $0xc8] ss:$16 sps:$4 sm:$0xff]   ;;  %v1479_v46 = vld [vmem:[#allocation7 + $0xac] ss:$16 sps:$4 sm:$0xff]  }
  0x5e   :  { %1031 = vmatprep.subr.bf16.mxu0 %v1431_v47  ;;  %1072 = vmatprep.subr.bf16.mxu1 %v1434_v48  ;;  %v1482_v47 = vld [vmem:[#allocation7 + $0x2ac] ss:$16 sps:$4 sm:$0xff]   ;;  %v1477_v48 = vld [vmem:[#allocation7 + $0xa8] ss:$16 sps:$4 sm:$0xff]  }
  0x61   :  { %1032 = vmatpush2.bf16.msra.mxu0 %v1429_v49  ;;  %1073 = vmatpush2.bf16.msra.mxu1 %v1432_v50  ;;  %v1480_v49 = vld [vmem:[#allocation7 + $0x2a8] ss:$16 sps:$4 sm:$0xff]   ;;  %v1485_v50 = vld [vmem:[#allocation7 + $0x8c] ss:$16 sps:$4 sm:$0xff]  }
  0x62   :  { %1033 = vmatprep.subr.bf16.mxu0 %v1437_v51  ;;  %1074 = vmatprep.subr.bf16.mxu1 %v1440_v52  ;;  %v1488_v51 = vld [vmem:[#allocation7 + $0x28c] ss:$16 sps:$4 sm:$0xff]   ;;  %v1483_v52 = vld [vmem:[#allocation7 + $0x88] ss:$16 sps:$4 sm:$0xff]  }
  0x65   :  { %1034 = vmatpush2.bf16.msra.mxu0 %v1435_v53  ;;  %1075 = vmatpush2.bf16.msra.mxu1 %v1438_v54  ;;  %v1486_v53 = vld [vmem:[#allocation7 + $0x288] ss:$16 sps:$4 sm:$0xff]   ;;  %v1491_v54 = vld [vmem:[#allocation7 + $0x6c] ss:$16 sps:$4 sm:$0xff]  }
  0x66   :  { %1035 = vmatprep.subr.bf16.mxu0 %v1443_v55  ;;  %1076 = vmatprep.subr.bf16.mxu1 %v1446_v56  ;;  %v1494_v55 = vld [vmem:[#allocation7 + $0x26c] ss:$16 sps:$4 sm:$0xff]   ;;  %v1489_v56 = vld [vmem:[#allocation7 + $0x68] ss:$16 sps:$4 sm:$0xff]  }
  0x69   :  { %1036 = vmatpush2.bf16.msra.mxu0 %v1441_v57  ;;  %1077 = vmatpush2.bf16.msra.mxu1 %v1444_v58  ;;  %v1492_v57 = vld [vmem:[#allocation7 + $0x268] ss:$16 sps:$4 sm:$0xff]   ;;  %v1497_v58 = vld [vmem:[#allocation7 + $0x4c] ss:$16 sps:$4 sm:$0xff]  }
  0x6a   :  { %1037 = vmatprep.subr.bf16.mxu0 %v1449_v59  ;;  %1078 = vmatprep.subr.bf16.mxu1 %v1452_v60  ;;  %v1500_v59 = vld [vmem:[#allocation7 + $0x24c] ss:$16 sps:$4 sm:$0xff]   ;;  %v1495_v60 = vld [vmem:[#allocation7 + $0x48] ss:$16 sps:$4 sm:$0xff]  }
  0x6d   :  { %1038 = vmatpush2.bf16.msra.mxu0 %v1447_v61  ;;  %1079 = vmatpush2.bf16.msra.mxu1 %v1450_v62  ;;  %v1498_v61 = vld [vmem:[#allocation7 + $0x248] ss:$16 sps:$4 sm:$0xff]   ;;  %v1503_v62 = vld [vmem:[#allocation7 + $0x2c] ss:$16 sps:$4 sm:$0xff]  }
  0x6e   :  { %1039 = vmatprep.subr.bf16.mxu0 %v1455_v63  ;;  %1080 = vmatprep.subr.bf16.mxu1 %v1458_v0  ;;  %v1506_v63 = vld [vmem:[#allocation7 + $0x22c] ss:$16 sps:$4 sm:$0xff]   ;;  %v1501_v0 = vld [vmem:[#allocation7 + $0x28] ss:$16 sps:$4 sm:$0xff]  }
  0x71   :  { %1040 = vmatpush2.bf16.msra.mxu0 %v1453_v1  ;;  %1081 = vmatpush2.bf16.msra.mxu1 %v1456_v2  ;;  %v1504_v1 = vld [vmem:[#allocation7 + $0x228] ss:$16 sps:$4 sm:$0xff]   ;;  %v1509_v2 = vld [vmem:[#allocation7 + $0xc] ss:$16 sps:$4 sm:$0xff]  }
  0x72   :  { %1041 = vmatprep.subr.bf16.mxu0 %v1461_v3  ;;  %1082 = vmatprep.subr.bf16.mxu1 %v1464_v4  ;;  %v1512_v3 = vld [vmem:[#allocation7 + $0x20c] ss:$16 sps:$4 sm:$0xff]   ;;  %v1507_v4 = vld [vmem:[#allocation7 + $0x8] ss:$16 sps:$4 sm:$0xff]  }
  0x75   :  { %1042 = vmatpush2.bf16.msra.mxu0 %v1459_v5  ;;  %1083 = vmatpush2.bf16.msra.mxu1 %v1462_v6  ;;  %v1510_v5 = vld [vmem:[#allocation7 + $0x208] ss:$16 sps:$4 sm:$0xff]   ;;  %v1515_v6 = vld [vmem:[#allocation7 + $0x1ec] ss:$16 sps:$4 sm:$0xff]  }
  0x76   :  { %1093 = vmatprep.subr.bf16.mxu0 %v1467_v7  ;;  %1134 = vmatprep.subr.bf16.mxu1 %v1470_v8  ;;  %v1518_v7 = vld [vmem:[#allocation7 + $0x3ec] ss:$16 sps:$4 sm:$0xff]   ;;  %v1513_v8 = vld [vmem:[#allocation7 + $0x1e8] ss:$16 sps:$4 sm:$0xff]  }
  0xf8   :  { %v165_v20 = vpop.f32.mrf.mxu0  ;;  %v206_v21 = vpop.f32.mrf.mxu1 }
  0xf9   :  { %v166_v22 = vadd.f32 %v165_v20, %v90_v16  ;;  %v207_v23 = vadd.f32 %v206_v21, %v98_v17  ;;  %v1519_v16 = vld [vmem:[#allocation7 + $0x1c8] ss:$16 sps:$4 sm:$0xff]  }
  0xfa   :  { %v167_v24 = vpop.f32.mrf.mxu0  ;;  %v208_v25 = vpop.f32.mrf.mxu1  ;;  %v1522_v17 = vld [vmem:[#allocation7 + $0x3c8] ss:$16 sps:$4 sm:$0xff]  }
  0xfb   :  { %v215_v26 = vmax.f32 %v207_v23, 0.0  ;;  %v168_v27 = vadd.f32 %v167_v24, %v94_v18  ;;  %v209_v28 = vadd.f32 %v208_v25, %v102_v19  ;;  %v213_v29 = vmax.f32 %v166_v22, 0.0  ;;  %v1527_v18 = vld [vmem:[#allocation7 + $0x1ac] ss:$16 sps:$4 sm:$0xff]   ;;  %v1525_v20 = vld [vmem:[#allocation7 + $0x1a8] ss:$16 sps:$4 sm:$0xff]  }
  0xfc   :  { %v169_v30 = vpop.f32.mrf.mxu0  ;;  %v210_v31 = vpop.f32.mrf.mxu1  ;;  %v1530_v19 = vld [vmem:[#allocation7 + $0x3ac] ss:$16 sps:$4 sm:$0xff]   ;;  %v1528_v21 = vld [vmem:[#allocation7 + $0x3a8] ss:$16 sps:$4 sm:$0xff]  }
  0xfd   :  { %v214_v32 = vmax.f32 %v168_v27, 0.0  ;;  %v216_v33 = vmax.f32 %v209_v28, 0.0  ;;  %v1721_v34 = vpack.c.bf16 %v215_v26, %v215_v26  ;;  %v1723_v41 = vpack.c.bf16 %v213_v29, %v213_v29  ;;  %v1533_v22 = vld [vmem:[#allocation7 + $0x18c] ss:$16 sps:$4 sm:$0xff]   ;;  %v1531_v24 = vld [vmem:[#allocation7 + $0x188] ss:$16 sps:$4 sm:$0xff]  }
  0xfe   :  { %v170_v35 = vpop.f32.mrf.mxu0  ;;  %v211_v36 = vpop.f32.mrf.mxu1  ;;  %v1536_v23 = vld [vmem:[#allocation7 + $0x38c] ss:$16 sps:$4 sm:$0xff]   ;;  %v1534_v25 = vld [vmem:[#allocation7 + $0x388] ss:$16 sps:$4 sm:$0xff]  }
  0xff   :  { %v218_v37 = vpack.c.bf16 %v214_v32, %v214_v32  ;;  %v220_v38 = vpack.c.bf16 %v216_v33, %v216_v33  ;;  %v1539_v26 = vld [vmem:[#allocation7 + $0x16c] ss:$16 sps:$4 sm:$0xff]   ;;  %v1537_v28 = vld [vmem:[#allocation7 + $0x168] ss:$16 sps:$4 sm:$0xff]  }
 0x100   :  { %v1542_v27 = vld [vmem:[#allocation7 + $0x36c] ss:$16 sps:$4 sm:$0xff]   ;;  %v1540_v29 = vld [vmem:[#allocation7 + $0x368] ss:$16 sps:$4 sm:$0xff]  }
 0x101   :  { %1043 = vmatprep.mubr.bf16.mxu0 %v218_v37  ;;  %1084 = vmatprep.mubr.bf16.mxu1 %v220_v38  ;;  %v1545_v30 = vld [vmem:[#allocation7 + $0x14c] ss:$16 sps:$4 sm:$0xff]   ;;  %v1543_v32 = vld [vmem:[#allocation7 + $0x148] ss:$16 sps:$4 sm:$0xff]  }
 0x102   :  { %1044 = vmatmul.mubr.bf16.vlgmr.msra.gmra.mxu0 %v1723_v41  ;;  %1085 = vmatmul.mubr.bf16.vlgmr.msra.gmra.mxu1 %v1721_v34  ;;  %v1548_v31 = vld [vmem:[#allocation7 + $0x34c] ss:$16 sps:$4 sm:$0xff]   ;;  %v1546_v33 = vld [vmem:[#allocation7 + $0x348] ss:$16 sps:$4 sm:$0xff]  }
 0x103   :  { %1094 = vmatpush1.bf16.msra.mxu0 %v1465_v39  ;;  %1135 = vmatpush1.bf16.msra.mxu1 %v1468_v40  ;;  %v1551_v35 = vld [vmem:[#allocation7 + $0x12c] ss:$16 sps:$4 sm:$0xff]  }
 0x104   :  { %1125 = vmatprep.mubr.bf16.mxu0 %v218_v37  ;;  %1166 = vmatprep.mubr.bf16.mxu1 %v220_v38  ;;  %v1554_v36 = vld [vmem:[#allocation7 + $0x32c] ss:$16 sps:$4 sm:$0xff]   ;;  %v1549_v37 = vld [vmem:[#allocation7 + $0x128] ss:$16 sps:$4 sm:$0xff]  }
 0x105   :  { %1095 = vmatprep.subr.bf16.mxu0 %v1473_v42  ;;  %1136 = vmatprep.subr.bf16.mxu1 %v1476_v43  ;;  %v1552_v38 = vld [vmem:[#allocation7 + $0x328] ss:$16 sps:$4 sm:$0xff]   ;;  %v1557_v39 = vld [vmem:[#allocation7 + $0x10c] ss:$16 sps:$4 sm:$0xff]  }
 0x106   :  { %v1560_v40 = vld [vmem:[#allocation7 + $0x30c] ss:$16 sps:$4 sm:$0xff]   ;;  %v1555_v42 = vld [vmem:[#allocation7 + $0x108] ss:$16 sps:$4 sm:$0xff]  }
 0x107   :  { %1096 = vmatpush1.bf16.msra.mxu0 %v1471_v44  ;;  %1137 = vmatpush1.bf16.msra.mxu1 %v1474_v45  ;;  %v1558_v43 = vld [vmem:[#allocation7 + $0x308] ss:$16 sps:$4 sm:$0xff]  }
 0x108   :  { %1097 = vmatprep.subr.bf16.mxu0 %v1479_v46  ;;  %1138 = vmatprep.subr.bf16.mxu1 %v1482_v47 }
 0x10b   :  { %1098 = vmatpush1.bf16.msra.mxu0 %v1477_v48  ;;  %1139 = vmatpush1.bf16.msra.mxu1 %v1480_v49 }
 0x10c   :  { %1099 = vmatprep.subr.bf16.mxu0 %v1485_v50  ;;  %1140 = vmatprep.subr.bf16.mxu1 %v1488_v51 }
 0x10f   :  { %1100 = vmatpush1.bf16.msra.mxu0 %v1483_v52  ;;  %1141 = vmatpush1.bf16.msra.mxu1 %v1486_v53  ;;  %v349_v52 = vld [vmem:[%s1750_s4] sm:$0xf] }
 0x110   :  { %1101 = vmatprep.subr.bf16.mxu0 %v1491_v54  ;;  %1142 = vmatprep.subr.bf16.mxu1 %v1494_v55  ;;  %v358_v53 = vrot.slane %v349_v52, %v1713_v14  ;;  %v354_v54 = vrot.slane %v349_v52, %v1706_v11 }
 0x113   :  { %1102 = vmatpush1.bf16.msra.mxu0 %v1489_v56  ;;  %1143 = vmatpush1.bf16.msra.mxu1 %v1492_v57  ;;  %v362_v57 = vrot.slane %v349_v52, %v1708_v12 }
 0x114   :  { %1103 = vmatprep.subr.bf16.mxu0 %v1497_v58  ;;  %1144 = vmatprep.subr.bf16.mxu1 %v1500_v59  ;;  %v1179_v58 = vld [vmem:[#allocation8] sm:$0xf] }
 0x117   :  { %1104 = vmatpush1.bf16.msra.mxu0 %v1495_v60  ;;  %1145 = vmatpush1.bf16.msra.mxu1 %v1498_v61  ;;  %v1188_v60 = vrot.slane %v1179_v58, %v1713_v14  ;;  %v366_v61 = vrot.slane %v349_v52, %v1715_v15 }
 0x118   :  { %1105 = vmatprep.subr.bf16.mxu0 %v1503_v62  ;;  %1146 = vmatprep.subr.bf16.mxu1 %v1506_v63 }
 0x11b   :  { %1106 = vmatpush1.bf16.msra.mxu0 %v1501_v0  ;;  %1147 = vmatpush1.bf16.msra.mxu1 %v1504_v1  ;;  %v1184_v1 = vrot.slane %v1179_v58, %v1706_v11 }
 0x11c   :  { %1107 = vmatprep.subr.bf16.mxu0 %v1509_v2  ;;  %1148 = vmatprep.subr.bf16.mxu1 %v1512_v3 }
 0x11f   :  { %1108 = vmatpush1.bf16.msra.mxu0 %v1507_v4  ;;  %1149 = vmatpush1.bf16.msra.mxu1 %v1510_v5 }
 0x120   :  { %1109 = vmatprep.subr.bf16.mxu0 %v1515_v6  ;;  %1150 = vmatprep.subr.bf16.mxu1 %v1518_v7  ;;  %v1192_v7 = vrot.slane %v1179_v58, %v1708_v12  ;;  %v1211_v12 = vstv %s1752_s6 }
 0x123   :  { %1110 = vmatpush2.bf16.msra.mxu0 %v1513_v8  ;;  %1151 = vmatpush2.bf16.msra.mxu1 %v1516_v9 }
 0x124   :  { %1111 = vmatprep.subr.bf16.mxu0 %v1521_v10  ;;  %1152 = vmatprep.subr.bf16.mxu1 %v1524_v13 }
 0x127   :  { %1112 = vmatpush2.bf16.msra.mxu0 %v1519_v16  ;;  %1153 = vmatpush2.bf16.msra.mxu1 %v1522_v17  ;;  %v1196_v17 = vrot.slane %v1179_v58, %v1715_v15 }
 0x128   :  { %1113 = vmatprep.subr.bf16.mxu0 %v1527_v18  ;;  %1154 = vmatprep.subr.bf16.mxu1 %v1530_v19 }
 0x12b   :  { %1114 = vmatpush2.bf16.msra.mxu0 %v1525_v20  ;;  %1155 = vmatpush2.bf16.msra.mxu1 %v1528_v21 }
 0x12c   :  { %1115 = vmatprep.subr.bf16.mxu0 %v1533_v22  ;;  %1156 = vmatprep.subr.bf16.mxu1 %v1536_v23 }
 0x12f   :  { %1116 = vmatpush2.bf16.msra.mxu0 %v1531_v24  ;;  %1157 = vmatpush2.bf16.msra.mxu1 %v1534_v25 }
 0x130   :  { %1117 = vmatprep.subr.bf16.mxu0 %v1539_v26  ;;  %1158 = vmatprep.subr.bf16.mxu1 %v1542_v27 }
 0x133   :  { %1118 = vmatpush2.bf16.msra.mxu0 %v1537_v28  ;;  %1159 = vmatpush2.bf16.msra.mxu1 %v1540_v29 }
 0x134   :  { %1119 = vmatprep.subr.bf16.mxu0 %v1545_v30  ;;  %1160 = vmatprep.subr.bf16.mxu1 %v1548_v31 }
 0x137   :  { %1120 = vmatpush2.bf16.msra.mxu0 %v1543_v32  ;;  %1161 = vmatpush2.bf16.msra.mxu1 %v1546_v33 }
 0x138   :  { %1121 = vmatprep.subr.bf16.mxu0 %v1551_v35  ;;  %1162 = vmatprep.subr.bf16.mxu1 %v1554_v36 }
 0x13b   :  { %1122 = vmatpush2.bf16.msra.mxu0 %v1549_v37  ;;  %1163 = vmatpush2.bf16.msra.mxu1 %v1552_v38 }
 0x13c   :  { %1123 = vmatprep.subr.bf16.mxu0 %v1557_v39  ;;  %1164 = vmatprep.subr.bf16.mxu1 %v1560_v40 }
 0x13f   :  { %1124 = vmatpush2.bf16.msra.mxu0 %v1555_v42  ;;  %1165 = vmatpush2.bf16.msra.mxu1 %v1558_v43 }
 0x142   :  { %1126 = vmatmul.mubr.bf16.vlgmr.msra.gmra.mxu0 %v1723_v41  ;;  %1167 = vmatmul.mubr.bf16.vlgmr.msra.gmra.mxu1 %v1721_v34 }
 0x1c2   :  { %v1045_v44 = vpop.f32.mrf.mxu0  ;;  %v1086_v45 = vpop.f32.mrf.mxu1 }
 0x1c3   :  { %v1046_v41 = vadd.f32 %v1045_v44, %v354_v54 }
 0x1c4   :  { %v1047_v46 = vpop.f32.mrf.mxu0  ;;  %v1088_v47 = vpop.f32.mrf.mxu1 }
 0x1c5   :  { %v1048_v55 = vadd.f32 %v1047_v46, %v358_v53  ;;  %v1087_v34 = vadd.f32 %v1086_v45, %v1046_v41 }
 0x1c6   :  { %v1049_v48 = vpop.f32.mrf.mxu0  ;;  %v1090_v49 = vpop.f32.mrf.mxu1 }
 0x1c7   :  { %v1089_v56 = vadd.f32 %v1088_v47, %v1048_v55  ;;  %v1175_v0 = vmax.f32 %v1087_v34, 0.0 }
 0x1c8   :  { %v1050_v50 = vpop.f32.mrf.mxu0  ;;  %v1091_v51 = vpop.f32.mrf.mxu1 }
 0x1c9   :  { %v1176_v59 = vmax.f32 %v1089_v56, 0.0  ;;  %v1201_v13 = vmul.f32 %v1184_v1, %v1175_v0 }
 0x1cb   :  { %v1202_v5 = vmul.f32 %v1188_v60, %v1176_v59 }
 0x1cd   :  { %v1205_v11 = vadd.f32 %v1202_v5, %v1201_v13 }
 0x202   :  { %v1127_v62 = vpop.f32.mrf.mxu0  ;;  %v1168_v63 = vpop.f32.mrf.mxu1 }
 0x203   :  { %v1128_v2 = vadd.f32 %v1127_v62, %v362_v57 }
 0x204   :  { %v1129_v3 = vpop.f32.mrf.mxu0  ;;  %v1170_v4 = vpop.f32.mrf.mxu1 }
 0x205   :  { %v1169_v6 = vadd.f32 %v1168_v63, %v1128_v2  ;;  %v1130_v8 = vadd.f32 %v1129_v3, %v366_v61 }
 0x206   :  { %v1131_v9 = vpop.f32.mrf.mxu0  ;;  %v1172_v10 = vpop.f32.mrf.mxu1 }
 0x207   :  { %v1177_v16 = vmax.f32 %v1169_v6, 0.0  ;;  %v1171_v14 = vadd.f32 %v1170_v4, %v1130_v8 }
 0x208   :  { %v1132_v18 = vpop.f32.mrf.mxu0  ;;  %v1173_v19 = vpop.f32.mrf.mxu1 }
 0x209   :  { %v1203_v20 = vmul.f32 %v1192_v7, %v1177_v16  ;;  %v1178_v21 = vmax.f32 %v1171_v14, 0.0 }
 0x20b   :  { %v1204_v22 = vmul.f32 %v1196_v17, %v1178_v21  ;;  %v1206_v23 = vadd.f32 %v1205_v11, %v1203_v20 }
 0x20d   :  { %v1207_v24 = vadd.f32 %v1206_v23, %v1204_v22 }
 0x20f   :  { %1208 = vadd.xlane.f32.xlu0 %v1207_v24 }
 0x298   :  { %v1209_v25 = vpop.xlane.xlu0 %1208 }
 0x299   :  { %v1212_v26 = vadd.f32 %v1211_v12, %v1209_v25 }
 0x29b   :  { %1214 = vst.msk [vmem:[%s1753_s7] sm:$0xff] %vm1213_vm1, %v1212_v26 }
 0x29c   :  { %1219 = vsyncpa [#allocation4], 1 }
 0x29d   :  { %1220 = vsyncpa [#allocation6], 1 }
 0x29e   :  { %1221 = vsyncpa [#allocation9], 1 }

</bundles_post_ra>
